<compile_context>
chip_gen: v6e
topology: v6e:2x2x1
jax: 0.10.0
libtpu: 0.0.40
codegen_flags: <defaults>
</compile_context>

<pallas_src>
import jax
import jax.numpy as jnp
from jax.experimental import pallas as pl
from jax.experimental.pallas import tpu as pltpu


def premlp_kernel(x_ref, w1_ref, b1_ref, w2_ref, b2_ref, w3_ref, b3_ref, out_ref):
    # x tile: (TB, img_dim). Weights are VMEM-resident (in, out) bf16.
    # MXU consumes bf16, accumulates f32; bias/ReLU in f32.
    x = x_ref[...].astype(jnp.bfloat16)

    h1 = jnp.dot(x, w1_ref[...], preferred_element_type=jnp.float32) + b1_ref[...]
    h1 = jnp.maximum(h1, 0.0)
    # dropout1: identity in eval mode

    h2 = jnp.dot(h1.astype(jnp.bfloat16), w2_ref[...],
                 preferred_element_type=jnp.float32) + b2_ref[...]
    h2 = jnp.maximum(h2, 0.0)
    # dropout2: identity in eval mode

    h3 = jnp.dot(h2.astype(jnp.bfloat16), w3_ref[...],
                 preferred_element_type=jnp.float32) + b3_ref[...]
    out_ref[...] = h3.astype(out_ref.dtype)


def prepare_params(params):
    """ONE-TIME conversion of PyTorch-layout params to kernel layout.

    (out, in) f32 weight -> (in, out) bf16; (out,) f32 bias -> (1, out) f32.
    Call this once at init, not per forward step, so no transpose/reshape ops
    sit on the hot path.
    """
    w1, b1, w2, b2, w3, b3 = params
    return (
        w1.T.astype(jnp.bfloat16), b1.reshape(1, -1).astype(jnp.float32),
        w2.T.astype(jnp.bfloat16), b2.reshape(1, -1).astype(jnp.float32),
        w3.T.astype(jnp.bfloat16), b3.reshape(1, -1).astype(jnp.float32),
    )


def premlp_forward(x, kernel_params, seq_len, embed_dim, *, batch_tile=256):
    """x: (B, img_dim) float32 -> (B, seq_len, embed_dim) float32."""
    w1t, b1r, w2t, b2r, w3t, b3r = kernel_params
    B, img_dim = x.shape
    out_dim = seq_len * embed_dim

    # Batch tile: whole batch if small, otherwise a fixed tile (multiple of 8).
    if B <= batch_tile:
        tb = B
    else:
        assert B % batch_tile == 0, "batch must be divisible by the batch tile"
        tb = batch_tile
    grid = (B // tb,)

    # Weights/biases stay resident in VMEM across the batch grid.
    const_spec = lambda shape: pl.BlockSpec(shape, lambda i: (0, 0))

    flops = 2 * B * img_dim * (2 * img_dim + out_dim)
    bytes_accessed = (
        x.size * x.dtype.itemsize
        + sum(int(p.size) * p.dtype.itemsize for p in kernel_params)
        + B * out_dim * 4
    )
    cost = pl.CostEstimate(flops=flops, transcendentals=0,
                           bytes_accessed=bytes_accessed)

    out = pl.pallas_call(
        premlp_kernel,
        out_shape=jax.ShapeDtypeStruct((B, out_dim), jnp.float32),
        grid_spec=pltpu.PrefetchScalarGridSpec(
            num_scalar_prefetch=0,
            grid=grid,
            in_specs=[
                pl.BlockSpec((tb, img_dim), lambda i: (i, 0)),   # x tile
                const_spec((img_dim, img_dim)),                  # w1 (in,out) bf16
                const_spec((1, img_dim)),                        # b1 f32
                const_spec((img_dim, img_dim)),                  # w2
                const_spec((1, img_dim)),                        # b2
                const_spec((img_dim, out_dim)),                  # w3
                const_spec((1, out_dim)),                        # b3
            ],
            out_specs=pl.BlockSpec((tb, out_dim), lambda i: (i, 0)),
        ),
        compiler_params=pltpu.CompilerParams(
            dimension_semantics=("parallel",),   # batch axis -> both TCs on v7x
            vmem_limit_bytes=8 << 20,            # working set ~150 KiB; leave headroom
        ),
        cost_estimate=cost,
    )(x, w1t, b1r, w2t, b2r, w3t, b3r)

    # Glue: view(-1, seq_len, embed_dim)
    return out.reshape(B, seq_len, embed_dim)


def init_params(key, img_dim, seq_len, embed_dim):
    """Deterministic synthetic init matching nn.Linear parameter shapes (PyTorch layout)."""
    out_dim = seq_len * embed_dim
    ks = jax.random.split(key, 6)

    def linear_init(kw, kb, fan_in, fan_out):
        bound = 1.0 / jnp.sqrt(jnp.float32(fan_in))
        w = jax.random.uniform(kw, (fan_out, fan_in), jnp.float32, -bound, bound)
        b = jax.random.uniform(kb, (fan_out,), jnp.float32, -bound, bound)
        return w, b

    w1, b1 = linear_init(ks[0], ks[1], img_dim, img_dim)
    w2, b2 = linear_init(ks[2], ks[3], img_dim, img_dim)
    w3, b3 = linear_init(ks[4], ks[5], img_dim, out_dim)
    return (w1, b1, w2, b2, w3, b3)


def premlp_reference(x, params, seq_len, embed_dim):
    """Pure-JAX f32 reference with PyTorch-layout params (eval-mode dropout)."""
    w1, b1, w2, b2, w3, b3 = params
    h = jnp.maximum(x @ w1.T + b1, 0.0)
    h = jnp.maximum(h @ w2.T + b2, 0.0)
    h = h @ w3.T + b3
    return h.reshape(-1, seq_len, embed_dim)


if __name__ == "__main__":
    # Small shapes consistent with the module's forward:
    # batch=8, img_dim=128 (flattened image features), seq_len=8, embed_dim=32.
    B, IMG_DIM, SEQ_LEN, EMBED_DIM = 8, 128, 8, 32

    key = jax.random.PRNGKey(0)
    kx, kp = jax.random.split(key)
    x = jax.random.normal(kx, (B, IMG_DIM), jnp.float32)

    params = init_params(kp, IMG_DIM, SEQ_LEN, EMBED_DIM)      # PyTorch layout, f32
    kernel_params = prepare_params(params)                     # one-time: (in,out) bf16 + f32 biases

    out = premlp_forward(x, kernel_params, SEQ_LEN, EMBED_DIM)
    out = jax.block_until_ready(out)

    ref = premlp_reference(x, params, SEQ_LEN, EMBED_DIM)
    assert out.shape == (B, SEQ_LEN, EMBED_DIM), out.shape
    # bf16 MXU path with f32 accumulation: loosen tolerance vs. the f32 reference.
    assert jnp.allclose(out, ref, atol=5e-2, rtol=5e-2), "mismatch vs reference"

    # TODO(synk): training-mode Dropout(p=0.5) (stochastic masking via pltpu.prng_*)
    # is not implemented; this kernel matches module.eval() semantics.
    print("KERNEL_OK")
</pallas_src>

<mosaic_0001>
module attributes {stable_mosaic.version = 11 : i64} {
  func.func @premlp_kernel(%arg0: i32, %arg1: memref<8x128xf32, #tpu.memory_space<vmem>>, %arg2: memref<128x128xbf16, #tpu.memory_space<vmem>>, %arg3: memref<1x128xf32, #tpu.memory_space<vmem>>, %arg4: memref<128x128xbf16, #tpu.memory_space<vmem>>, %arg5: memref<1x128xf32, #tpu.memory_space<vmem>>, %arg6: memref<128x256xbf16, #tpu.memory_space<vmem>>, %arg7: memref<1x256xf32, #tpu.memory_space<vmem>>, %arg8: memref<8x256xf32, #tpu.memory_space<vmem>>) attributes {dimension_semantics = [#tpu.dimension_semantics<parallel>], iteration_bounds = array<i64: 1>, scalar_prefetch = 0 : i64, scratch_operands = 0 : i64, tpu.core_type = #tpu.core_type<tc>, window_params = [{transform_indices = @transform_0, window_bounds = array<i64: 8, 128>}, {pipeline_mode = #tpu.pipeline_mode<synchronous>, transform_indices = @transform_1, window_bounds = array<i64: 128, 128>}, {pipeline_mode = #tpu.pipeline_mode<synchronous>, transform_indices = @transform_2, window_bounds = array<i64: 1, 128>}, {pipeline_mode = #tpu.pipeline_mode<synchronous>, transform_indices = @transform_3, window_bounds = array<i64: 128, 128>}, {pipeline_mode = #tpu.pipeline_mode<synchronous>, transform_indices = @transform_4, window_bounds = array<i64: 1, 128>}, {pipeline_mode = #tpu.pipeline_mode<synchronous>, transform_indices = @transform_5, window_bounds = array<i64: 128, 256>}, {pipeline_mode = #tpu.pipeline_mode<synchronous>, transform_indices = @transform_6, window_bounds = array<i64: 1, 256>}, {transform_indices = @transform_7, window_bounds = array<i64: 8, 256>}]} {
    %c0 = arith.constant 0 : index
    %c0_0 = arith.constant 0 : index
    %0 = vector.load %arg1[%c0, %c0_0] : memref<8x128xf32, #tpu.memory_space<vmem>>, vector<8x128xf32>
    %1 = arith.truncf %0 : vector<8x128xf32> to vector<8x128xbf16>
    %c0_1 = arith.constant 0 : index
    %c0_2 = arith.constant 0 : index
    %2 = vector.load %arg2[%c0_1, %c0_2] : memref<128x128xbf16, #tpu.memory_space<vmem>>, vector<128x128xbf16>
    %cst = arith.constant dense<0.000000e+00> : vector<8x128xf32>
    %3 = tpu.matmul %1, %2, %cst {dimension_numbers = #tpu.dot_dimension_numbers<[1], [0], [0], [1], [0, 0, 1, 1], [], []>} : vector<8x128xbf16>, vector<128x128xbf16>, vector<8x128xf32> -> vector<8x128xf32>
    %c0_3 = arith.constant 0 : index
    %c0_4 = arith.constant 0 : index
    %4 = vector.load %arg3[%c0_3, %c0_4] : memref<1x128xf32, #tpu.memory_space<vmem>>, vector<1x128xf32>
    %5 = vector.broadcast %4 : vector<1x128xf32> to vector<8x128xf32>
    %6 = arith.addf %3, %5 : vector<8x128xf32>
    %cst_5 = arith.constant 0.000000e+00 : f32
    %7 = vector.broadcast %cst_5 : f32 to vector<8x128xf32>
    %8 = arith.maximumf %6, %7 : vector<8x128xf32>
    %9 = arith.truncf %8 : vector<8x128xf32> to vector<8x128xbf16>
    %c0_6 = arith.constant 0 : index
    %c0_7 = arith.constant 0 : index
    %10 = vector.load %arg4[%c0_6, %c0_7] : memref<128x128xbf16, #tpu.memory_space<vmem>>, vector<128x128xbf16>
    %cst_8 = arith.constant dense<0.000000e+00> : vector<8x128xf32>
    %11 = tpu.matmul %9, %10, %cst_8 {dimension_numbers = #tpu.dot_dimension_numbers<[1], [0], [0], [1], [0, 0, 1, 1], [], []>} : vector<8x128xbf16>, vector<128x128xbf16>, vector<8x128xf32> -> vector<8x128xf32>
    %c0_9 = arith.constant 0 : index
    %c0_10 = arith.constant 0 : index
    %12 = vector.load %arg5[%c0_9, %c0_10] : memref<1x128xf32, #tpu.memory_space<vmem>>, vector<1x128xf32>
    %13 = vector.broadcast %12 : vector<1x128xf32> to vector<8x128xf32>
    %14 = arith.addf %11, %13 : vector<8x128xf32>
    %cst_11 = arith.constant 0.000000e+00 : f32
    %15 = vector.broadcast %cst_11 : f32 to vector<8x128xf32>
    %16 = arith.maximumf %14, %15 : vector<8x128xf32>
    %17 = arith.truncf %16 : vector<8x128xf32> to vector<8x128xbf16>
    %c0_12 = arith.constant 0 : index
    %c0_13 = arith.constant 0 : index
    %18 = vector.load %arg6[%c0_12, %c0_13] : memref<128x256xbf16, #tpu.memory_space<vmem>>, vector<128x256xbf16>
    %cst_14 = arith.constant dense<0.000000e+00> : vector<8x256xf32>
    %19 = tpu.matmul %17, %18, %cst_14 {dimension_numbers = #tpu.dot_dimension_numbers<[1], [0], [0], [1], [0, 0, 1, 1], [], []>} : vector<8x128xbf16>, vector<128x256xbf16>, vector<8x256xf32> -> vector<8x256xf32>
    %c0_15 = arith.constant 0 : index
    %c0_16 = arith.constant 0 : index
    %20 = vector.load %arg7[%c0_15, %c0_16] : memref<1x256xf32, #tpu.memory_space<vmem>>, vector<1x256xf32>
    %21 = vector.broadcast %20 : vector<1x256xf32> to vector<8x256xf32>
    %22 = arith.addf %19, %21 : vector<8x256xf32>
    %c0_17 = arith.constant 0 : index
    %c0_18 = arith.constant 0 : index
    %23 = vector.load %arg8[%c0_17, %c0_18] : memref<8x256xf32, #tpu.memory_space<vmem>>, vector<8x256xf32>
    tpu.vector_store %arg8[%c0_17, %c0_18], %22 {strides = array<i32>} : memref<8x256xf32, #tpu.memory_space<vmem>>, vector<8x256xf32>,
    return
  }
  func.func @transform_0(%arg0: i32) -> (i32, i32) {
    %c0_i32 = arith.constant 0 : i32
    %c0_i32_0 = arith.constant 0 : i32
    return %arg0, %c0_i32 : i32, i32
  }
  func.func @transform_1(%arg0: i32) -> (i32, i32) {
    %c0_i32 = arith.constant 0 : i32
    %c0_i32_0 = arith.constant 0 : i32
    %c0_i32_1 = arith.constant 0 : i32
    return %c0_i32, %c0_i32_0 : i32, i32
  }
  func.func @transform_2(%arg0: i32) -> (i32, i32) {
    %c0_i32 = arith.constant 0 : i32
    %c0_i32_0 = arith.constant 0 : i32
    %c0_i32_1 = arith.constant 0 : i32
    return %c0_i32, %c0_i32_0 : i32, i32
  }
  func.func @transform_3(%arg0: i32) -> (i32, i32) {
    %c0_i32 = arith.constant 0 : i32
    %c0_i32_0 = arith.constant 0 : i32
    %c0_i32_1 = arith.constant 0 : i32
    return %c0_i32, %c0_i32_0 : i32, i32
  }
  func.func @transform_4(%arg0: i32) -> (i32, i32) {
    %c0_i32 = arith.constant 0 : i32
    %c0_i32_0 = arith.constant 0 : i32
    %c0_i32_1 = arith.constant 0 : i32
    return %c0_i32, %c0_i32_0 : i32, i32
  }
  func.func @transform_5(%arg0: i32) -> (i32, i32) {
    %c0_i32 = arith.constant 0 : i32
    %c0_i32_0 = arith.constant 0 : i32
    %c0_i32_1 = arith.constant 0 : i32
    return %c0_i32, %c0_i32_0 : i32, i32
  }
  func.func @transform_6(%arg0: i32) -> (i32, i32) {
    %c0_i32 = arith.constant 0 : i32
    %c0_i32_0 = arith.constant 0 : i32
    %c0_i32_1 = arith.constant 0 : i32
    return %c0_i32, %c0_i32_0 : i32, i32
  }
  func.func @transform_7(%arg0: i32) -> (i32, i32) {
    %c0_i32 = arith.constant 0 : i32
    %c0_i32_0 = arith.constant 0 : i32
    return %arg0, %c0_i32 : i32, i32
  }
}

</mosaic_0001>

<bundles_post_ra>
// kernel: tpu_custom_call.1
= control target key start
LH: loop header
LB: loop body
LE: loop exit
PB: predicated region body
PF: predicated region fallthrough
CT: control target
= control target key end

     0   :  { %12 = vsyncpa [#allocation3], 0  ;;  %s805_s0 = inlined_call_operand.hbm [shape: f32[8,128], index: 0, kind: input, shape index: {}]   ;;  %s806_s1 = inlined_call_operand.hbm [shape: bf16[128,128], index: 1, kind: input, shape index: {}]   ;;  %s807_s2 = inlined_call_operand.vmem [shape: f32[1,128], index: 2, kind: input, shape index: {}]   ;;  %s808_s3 = inlined_call_operand.hbm [shape: bf16[128,128], index: 3, kind: input, shape index: {}]   ;;  %s809_s4 = inlined_call_operand.vmem [shape: f32[1,128], index: 4, kind: input, shape index: {}]   ;;  %s810_s5 = inlined_call_operand.hbm [shape: bf16[128,256], index: 5, kind: input, shape index: {}]   ;;  %s811_s6 = inlined_call_operand.vmem [shape: f32[1,256], index: 6, kind: input, shape index: {}]   ;;  %s812_s7 = inlined_call_operand.hbm [shape: f32[8,256], index: 7, kind: output, shape index: {}]  }
   0x1   :  { %13 = vsyncpa [#allocation6], 0 }
   0x2   :  { %14 = vsyncpa [#allocation9], 0 }
   0x3   :  { %15 = vsyncpa [#allocation4], 0  ;;  %s729_s24 = smov [#allocation5]  }
   0x4   :  { %s31_s25 = sshll.u32 %s729_s24, 4  ;;  %s32_s25 = int_to_ptr.vmem [resolvable:$true] %s31_s25 }
   0x5   :  { %s629_s26 = scalar_lea.vmem %s32_s25, 1024  ;;  %p634_p1 = scmp.lt.s32.totalorder %s32_s25, %s32_s25 }
   0x6   :  { %p630_p0 = scmp.ne.s32.totalorder %s32_s25, %s629_s26  ;;  %p635_p2 = scmp.lt.s32.totalorder %s629_s26, %s629_s26 }
   0x8   :  { %p636_p3 = por %p635_p2, %p634_p1 }
   0xa   :  { %p637_p4 = pnand %p636_p3, %p630_p0 }
   0xc   :  { %640 = shalt.err (!%p637_p4)
}
   0xd   :  { %s730_s27 = smov 64   ;;  %s731_s28 = smov 4  }
   0xe   :  { %37 = dma.hbm_to_vmem [thread:$0]  %s806_s1, 1024, %s32_s25, [#allocation6], %s730_s27, %s730_s27, %s731_s28  }
   0xf   :  { %s732_s8 = smov [#allocation2]   ;;  %s733_s10 = smov [#allocation7]  }
  0x10   :  { %s22_s9 = sshll.u32 %s732_s8, 4  ;;  %s45_s11 = sshll.u32 %s733_s10, 4  ;;  %s23_s9 = int_to_ptr.vmem [resolvable:$true] %s22_s9  ;;  %s46_s11 = int_to_ptr.vmem [resolvable:$true] %s45_s11 }
  0x11   :  { %s649_s12 = scalar_lea.vmem %s23_s9, 128  ;;  %p654_p6 = scmp.lt.s32.totalorder %s23_s9, %s23_s9 }
  0x12   :  { %p650_p5 = scmp.ne.s32.totalorder %s23_s9, %s649_s12  ;;  %p655_p7 = scmp.lt.s32.totalorder %s649_s12, %s649_s12 }
  0x14   :  { %p656_p8 = por %p655_p7, %p654_p6 }
  0x16   :  { %p657_p9 = pnand %p656_p8, %p650_p5 }
  0x18   :  { %660 = shalt.err (!%p657_p9)
}
  0x19   :  { %25 = dma.hbm_to_vmem [thread:$0]  %s805_s0, 128, %s23_s9, [#allocation3]  }
  0x1a   :  { %s669_s15 = scalar_lea.vmem %s46_s11, 1024  ;;  %p674_p11 = scmp.lt.s32.totalorder %s46_s11, %s46_s11 }
  0x1b   :  { %p670_p10 = scmp.ne.s32.totalorder %s46_s11, %s669_s15  ;;  %p675_p12 = scmp.lt.s32.totalorder %s669_s15, %s669_s15 }
  0x1d   :  { %p676_p13 = por %p675_p12, %p674_p11 }
  0x1f   :  { %p677_p0 = pnand %p676_p13, %p670_p10 }
  0x21   :  { %680 = shalt.err (!%p677_p0)
}
  0x22   :  { %51 = dma.hbm_to_vmem [thread:$0]  %s808_s3, 1024, %s46_s11, [#allocation6], %s730_s27, %s730_s27, %s731_s28  }
  0x23   :  { %s734_s17 = smov [#allocation8]  }
  0x24   :  { %s59_s18 = sshll.u32 %s734_s17, 4  ;;  %s60_s18 = int_to_ptr.vmem [resolvable:$true] %s59_s18 }
  0x25   :  { %s689_s19 = scalar_lea.vmem %s60_s18, 2048  ;;  %p694_p2 = scmp.lt.s32.totalorder %s60_s18, %s60_s18 }
  0x26   :  { %p690_p1 = scmp.ne.s32.totalorder %s60_s18, %s689_s19  ;;  %p695_p3 = scmp.lt.s32.totalorder %s689_s19, %s689_s19 }
  0x28   :  { %p696_p4 = por %p695_p3, %p694_p2 }
  0x2a   :  { %p697_p5 = pnand %p696_p4, %p690_p1 }
  0x2c   :  { %700 = shalt.err (!%p697_p5)
}
  0x2d   :  { %s735_s0 = smov 128   ;;  %s736_s20 = smov 8  }
  0x2e   :  { %65 = dma.hbm_to_vmem [thread:$0]  %s810_s5, 2048, %s60_s18, [#allocation9], %s735_s0, %s735_s0, %s736_s20  }
  0x2f   :  { %721 = dma.done.wait [#allocation3], 128  }
  0x30   :  { %722 = vsyncadd [#allocation3], 4294967168 }
  0x31   :  { %723 = dma.done.wait [#allocation6], 2048  }
  0x32   :  { %724 = vsyncadd [#allocation6], 4294965248 }
  0x33   :  { %725 = dma.done.wait [#allocation9], 2048  }
  0x34   :  { %726 = vsyncadd [#allocation9], 4294965248  ;;  %v737_v0 = vmov 0.0   ;;  %vm738_vm0 = vmmov 0   ;;  %v581_v1 = vld [vmem:[#allocation5 + $0x38] sm:$0xff]   ;;  %v582_v2 = vld [vmem:[#allocation5 + $0x30] sm:$0xff]   ;;  %v327_v52 = vlaneseq }
  0x35   :  { %529 = vmatprep.subr.bf16.mxu0 %v737_v0  ;;  %545 = vmatprep.mubr.msk.bf16.mxu0 %vm738_vm0, %v737_v0  ;;  %v583_v3 = vld [vmem:[#allocation5 + $0x28] sm:$0xff]   ;;  %v589_v4 = vld [vmem:[#allocation7 + $0x38] sm:$0xff]   ;;  %v584_v5 = vld [vmem:[#allocation5 + $0x20] sm:$0xff]   ;;  %v739_v43 = vmov 0  }
  0x36   :  { %549 = vmatprep.subr.bf16.mxu1 %v737_v0  ;;  %565 = vmatprep.mubr.msk.bf16.mxu1 %vm738_vm0, %v737_v0  ;;  %v590_v6 = vld [vmem:[#allocation7 + $0x30] sm:$0xff]   ;;  %v585_v7 = vld [vmem:[#allocation5 + $0x18] sm:$0xff]   ;;  %v591_v8 = vld [vmem:[#allocation7 + $0x28] sm:$0xff]   ;;  %v328_v53 = vshrl.u32 %v327_v52, 7 }
  0x37   :  { %530 = vmatpush3.bf16.msra.mxu0 %v581_v1  ;;  %550 = vmatpush3.bf16.msra.mxu1 %v589_v4  ;;  %v586_v9 = vld [vmem:[#allocation5 + $0x10] sm:$0xff]   ;;  %v592_v10 = vld [vmem:[#allocation7 + $0x20] sm:$0xff]   ;;  %v587_v11 = vld [vmem:[#allocation5 + $0x8] sm:$0xff]  }
  0x38   :  { %531 = vmatprep.subr.bf16.mxu0 %v737_v0  ;;  %551 = vmatprep.subr.bf16.mxu1 %v737_v0  ;;  %v593_v12 = vld [vmem:[#allocation7 + $0x18] sm:$0xff]   ;;  %v588_v13 = vld [vmem:[#allocation5] sm:$0xff]   ;;  %v594_v15 = vld [vmem:[#allocation7 + $0x10] sm:$0xff]   ;;  %v329_v54 = vsub.s32 0, %v328_v53  ;;  %v333_v56 = vsub.s32 1, %v328_v53 }
  0x39   :  { %v81_v14 = vld [vmem:[#allocation2] sm:$0xff]  ;;  %v595_v17 = vld [vmem:[#allocation7 + $0x8] sm:$0xff]   ;;  %v596_v18 = vld [vmem:[#allocation7] sm:$0xff]  }
  0x3a   :  { %v82_v16 = vpack.c.bf16 %v81_v14, %v81_v14  ;;  %v597_v19 = vld [vmem:[#allocation8 + $0x70] ss:$8 sps:$4 sm:$0xff]   ;;  %v599_v20 = vld [vmem:[#allocation8 + $0x74] ss:$8 sps:$4 sm:$0xff]   ;;  %v602_v21 = vld [vmem:[#allocation8 + $0x64] ss:$8 sps:$4 sm:$0xff]  }
  0x3b   :  { %532 = vmatpush3.bf16.msra.mxu0 %v582_v2  ;;  %552 = vmatpush3.bf16.msra.mxu1 %v590_v6  ;;  %v600_v22 = vld [vmem:[#allocation8 + $0x60] ss:$8 sps:$4 sm:$0xff]   ;;  %v605_v23 = vld [vmem:[#allocation8 + $0x54] ss:$8 sps:$4 sm:$0xff]   ;;  %v603_v24 = vld [vmem:[#allocation8 + $0x50] ss:$8 sps:$4 sm:$0xff]  }
  0x3c   :  { %533 = vmatprep.subr.bf16.mxu0 %v737_v0  ;;  %553 = vmatprep.subr.bf16.mxu1 %v737_v0  ;;  %v608_v25 = vld [vmem:[#allocation8 + $0x44] ss:$8 sps:$4 sm:$0xff]   ;;  %v606_v26 = vld [vmem:[#allocation8 + $0x40] ss:$8 sps:$4 sm:$0xff]   ;;  %v611_v27 = vld [vmem:[#allocation8 + $0x34] ss:$8 sps:$4 sm:$0xff]  }
  0x3d   :  { %v609_v28 = vld [vmem:[#allocation8 + $0x30] ss:$8 sps:$4 sm:$0xff]   ;;  %v614_v29 = vld [vmem:[#allocation8 + $0x24] ss:$8 sps:$4 sm:$0xff]   ;;  %v612_v30 = vld [vmem:[#allocation8 + $0x20] ss:$8 sps:$4 sm:$0xff]  }
  0x3e   :  { %v617_v31 = vld [vmem:[#allocation8 + $0x14] ss:$8 sps:$4 sm:$0xff]   ;;  %v615_v32 = vld [vmem:[#allocation8 + $0x10] ss:$8 sps:$4 sm:$0xff]   ;;  %v620_v41 = vld [vmem:[#allocation8 + $0x4] ss:$8 sps:$4 sm:$0xff]  }
  0x3f   :  { %534 = vmatpush3.bf16.msra.mxu0 %v583_v3  ;;  %554 = vmatpush3.bf16.msra.mxu1 %v591_v8  ;;  %v477_v33 = vld [vmem:[%s807_s2] ss:$0 sm:$0xff]  ;;  %v618_v42 = vld [vmem:[#allocation8] ss:$8 sps:$4 sm:$0xff]  }
  0x40   :  { %535 = vmatprep.subr.bf16.mxu0 %v737_v0  ;;  %555 = vmatprep.subr.bf16.mxu1 %v737_v0  ;;  %v486_v44 = vld [vmem:[%s809_s4] ss:$0 sm:$0xff]  ;;  %s740_s4 = smov [#allocation10]  }
  0x41   :  { %v325_v55 = vld [vmem:[%s811_s6] sm:$0x3]  ;;  %s466_s26 = sshll.u32 %s740_s4, 4  ;;  %s467_s26 = int_to_ptr.vmem [resolvable:$true] %s466_s26 }
  0x42   :  { %v330_v57 = vrot.slane %v325_v55, %v329_v54  ;;  %v334_v58 = vrot.slane %v325_v55, %v333_v56  ;;  %s701_s27 = scalar_lea.vmem %s467_s26, 256  ;;  %p706_p7 = scmp.lt.s32.totalorder %s467_s26, %s467_s26 }
  0x43   :  { %536 = vmatpush3.bf16.msra.mxu0 %v584_v5  ;;  %556 = vmatpush3.bf16.msra.mxu1 %v592_v10  ;;  %p702_p6 = scmp.ne.s32.totalorder %s467_s26, %s701_s27  ;;  %p707_p8 = scmp.lt.s32.totalorder %s701_s27, %s701_s27 }
  0x44   :  { %537 = vmatprep.subr.bf16.mxu0 %v737_v0  ;;  %557 = vmatprep.subr.bf16.mxu1 %v737_v0 }
  0x45   :  { %p708_p9 = por %p707_p8, %p706_p7 }
  0x47   :  { %538 = vmatpush3.bf16.msra.mxu0 %v585_v7  ;;  %558 = vmatpush3.bf16.msra.mxu1 %v593_v12  ;;  %p709_p10 = pnand %p708_p9, %p702_p6 }
  0x48   :  { %539 = vmatprep.subr.bf16.mxu0 %v737_v0  ;;  %559 = vmatprep.subr.bf16.mxu1 %v737_v0 }
  0x4b   :  { %540 = vmatpush3.bf16.msra.mxu0 %v586_v9  ;;  %560 = vmatpush3.bf16.msra.mxu1 %v594_v15 }
  0x4c   :  { %541 = vmatprep.subr.bf16.mxu0 %v737_v0  ;;  %561 = vmatprep.subr.bf16.mxu1 %v737_v0 }
  0x4f   :  { %542 = vmatpush3.bf16.msra.mxu0 %v587_v11  ;;  %562 = vmatpush3.bf16.msra.mxu1 %v595_v17 }
  0x50   :  { %543 = vmatprep.subr.bf16.mxu0 %v737_v0  ;;  %563 = vmatprep.subr.bf16.mxu1 %v737_v0 }
  0x53   :  { %544 = vmatpush3.bf16.msra.mxu0 %v588_v13  ;;  %564 = vmatpush3.bf16.msra.mxu1 %v596_v18 }
  0x54   :  { %417 = vmatprep.subr.bf16.mxu0 %v599_v20 }
  0x56   :  { %546 = vmatmul.mubr.bf16.vlgmr.msra.gmra.mxu0 %v82_v16 }
  0x57   :  { %418 = vmatpush1.bf16.msra.mxu0 %v597_v19  ;;  %449 = vmatprep.mubr.bf16.mxu0 %v739_v43 }
  0x58   :  { %419 = vmatprep.subr.bf16.mxu0 %v602_v21 }
  0x5b   :  { %420 = vmatpush1.bf16.msra.mxu0 %v600_v22 }
  0x5c   :  { %421 = vmatprep.subr.bf16.mxu0 %v605_v23 }
  0x5f   :  { %422 = vmatpush1.bf16.msra.mxu0 %v603_v24 }
  0x60   :  { %423 = vmatprep.subr.bf16.mxu0 %v608_v25 }
  0x63   :  { %424 = vmatpush1.bf16.msra.mxu0 %v606_v26 }
  0x64   :  { %425 = vmatprep.subr.bf16.mxu0 %v611_v27 }
  0x67   :  { %426 = vmatpush1.bf16.msra.mxu0 %v609_v28 }
  0x68   :  { %427 = vmatprep.subr.bf16.mxu0 %v614_v29 }
  0x6b   :  { %428 = vmatpush1.bf16.msra.mxu0 %v612_v30 }
  0x6c   :  { %429 = vmatprep.subr.bf16.mxu0 %v617_v31 }
  0x6f   :  { %430 = vmatpush1.bf16.msra.mxu0 %v615_v32 }
  0x70   :  { %431 = vmatprep.subr.bf16.mxu0 %v620_v41 }
  0x73   :  { %432 = vmatpush1.bf16.msra.mxu0 %v618_v42 }
 0x116   :  { %v188_v34 = vpop.f32.mrf.mxu0 }
 0x117   :  { %v189_v35 = vadd.f32 %v477_v33, %v188_v34 }
 0x118   :  { %v547_v36 = vpop.f32.mrf.mxu0 }
 0x119   :  { %v194_v37 = vmax.f32 %v189_v35, 0.0 }
 0x11a   :  { %v191_v38 = vpop.f32.mrf.mxu0 }
 0x11b   :  { %v195_v39 = vpack.c.bf16 %v194_v37, %v194_v37 }
 0x11c   :  { %v548_v40 = vpop.f32.mrf.mxu0 }
 0x11d   :  { %566 = vmatmul.mubr.bf16.vlgmr.msra.gmra.mxu1 %v195_v39 }
 0x1dd   :  { %v301_v45 = vpop.f32.mrf.mxu1 }
 0x1de   :  { %v302_v46 = vadd.f32 %v486_v44, %v301_v45 }
 0x1df   :  { %v567_v47 = vpop.f32.mrf.mxu1 }
 0x1e0   :  { %v307_v48 = vmax.f32 %v302_v46, 0.0 }
 0x1e1   :  { %v304_v49 = vpop.f32.mrf.mxu1 }
 0x1e2   :  { %v308_v50 = vpack.c.bf16 %v307_v48, %v307_v48 }
 0x1e3   :  { %v568_v51 = vpop.f32.mrf.mxu1 }
 0x1e4   :  { %450 = vmatmul.mubr.bf16.vlgmr.msra.gmra.mxu0 %v308_v50 }
 0x2a4   :  { %v451_v59 = vpop.f32.mrf.mxu0 }
 0x2a5   :  { %v452_v60 = vadd.f32 %v451_v59, %v330_v57 }
 0x2a6   :  { %v453_v61 = vpop.f32.mrf.mxu0 }
 0x2a7   :  { %458 = vst [vmem:[#allocation10] sm:$0xff] %v452_v60  ;;  %v454_v62 = vadd.f32 %v453_v61, %v334_v58 }
 0x2a8   :  { %v455_v63 = vpop.f32.mrf.mxu0 }
 0x2a9   :  { %459 = vst [vmem:[#allocation10 + $0x8] sm:$0xff] %v454_v62 }
 0x2aa   :  { %v456_v0 = vpop.f32.mrf.mxu0 }
 0x2ab   :  { %712 = shalt.err (!%p709_p10)
}
 0x2ac   :  { %469 = dma.vmem_to_hbm [thread:$0]  %s467_s26, 256, %s812_s7, [#allocation4]  }
 0x2ad   :  { %727 = dma.done.wait [#allocation4], 256  }
 0x2ae   :  { %728 = vsyncadd [#allocation4], 4294967040 }
 0x2af   :  { %473 = vsyncpa [#allocation3], 1 }
 0x2b0   :  { %474 = vsyncpa [#allocation6], 1 }
 0x2b1   :  { %475 = vsyncpa [#allocation9], 1 }
 0x2b2   :  { %476 = vsyncpa [#allocation4], 1 }

</bundles_post_ra>
